<compile_context>
chip_gen: v7x
topology: tpu7x:2x2x1
jax: 0.10.0
libtpu: 0.0.40
codegen_flags: <defaults>
</compile_context>

<pallas_src>
import jax
import jax.numpy as jnp
from jax.experimental import pallas as pl
from jax.experimental.pallas import tpu as pltpu

# ----- hyper-params (mirror TextCNNEncoder.__init__, small test sizes) -----
VOCAB_SIZE = 50
EMB_DIM = 32
SEQ_LEN = 16
BATCH = 2
FILTER_SIZES = (1, 2, 3, 4, 5, 6)
NUM_FILTERS = 40
FEATURE_DIM = 40

FS_MAX = max(FILTER_SIZES)                    # 6
K_REAL = FS_MAX * EMB_DIM                     # 192 (real im2col contraction depth)
K_PAD = pl.cdiv(K_REAL, 128) * 128            # 256 (lane-dense, full MXU K pass)
N_REAL = NUM_FILTERS * len(FILTER_SIZES)      # 240 (concatenated conv features)
N_PAD = pl.cdiv(N_REAL, 128) * 128            # 256 (lane-dense)
F_PAD = pl.cdiv(FEATURE_DIM, 128) * 128       # 128 (lane-dense output)
NEG = -1e30                                   # mask value for invalid time slots


# --------------------------------------------------------------------------
# Kernel
# --------------------------------------------------------------------------
def textcnn_kernel(slab_ref, wk_ref, bk_ref, mask_ref, wp_ref, bp_ref, out_ref):
    """slab_ref: (tb*S, K_PAD)  bf16  lane-dense im2col slab (built in wrapper)
       wk_ref:   (K_PAD, N_PAD) bf16  fused conv weight slab (resident)
       bk_ref:   (1, N_PAD)     f32   fused conv bias (pad cols = 0)
       mask_ref: (S, N_PAD)     f32   0 where valid, -1e30 otherwise
       wp_ref:   (N_PAD, F_PAD) bf16  projection weight (pad rows/cols = 0)
       bp_ref:   (1, F_PAD)     f32   projection bias (pad cols = 0)
       out_ref:  (tb, F_PAD)    f32
    """
    tb = out_ref.shape[0]
    s = mask_ref.shape[0]

    # Single fused MXU matmul for all six filter sizes (bf16 ops, f32 acc).
    acc = jnp.dot(slab_ref[...], wk_ref[...],
                  preferred_element_type=jnp.float32)            # (tb*s, N_PAD)

    # Free leading-dim split, then mask invalid time slots and max-pool over
    # time (sublane-axis reduction -> XLU; cheap relative to the MXU work).
    acc = acc.reshape(tb, s, N_PAD) + mask_ref[...][None, :, :]
    pooled = jnp.max(acc, axis=1)                                # (tb, N_PAD)

    # Conv bias + ReLU commuted past the max-pool (exactly equivalent).
    # Keep this epilogue in f32: padded cols carry -1e30 until ReLU clamps.
    h = jnp.maximum(pooled + bk_ref[...], 0.0)

    # TODO(synk): dropout is identity at inference (training=False); skipped.
    proj = jnp.dot(h.astype(jnp.bfloat16), wp_ref[...],
                   preferred_element_type=jnp.float32) + bp_ref[...]
    out_ref[...] = jnp.maximum(proj, 0.0)                        # (tb, F_PAD)


# --------------------------------------------------------------------------
# One-time parameter packing (hoisted out of the per-call path)
# --------------------------------------------------------------------------
def pack_params(conv_weights, conv_biases, wp, bp):
    """Pack per-filter weights into lane-dense slabs + build the time mask.

    Call ONCE at init; the results are constants for every forward call.
    """
    assert SEQ_LEN >= FS_MAX, "SEQ_LEN must be >= max(FILTER_SIZES)"

    wk = jnp.zeros((K_PAD, N_PAD), jnp.float32)
    bk = jnp.zeros((1, N_PAD), jnp.float32)
    for i, (w, b) in enumerate(zip(conv_weights, conv_biases)):
        fs = w.shape[0]
        wk = wk.at[:fs * EMB_DIM, i * NUM_FILTERS:(i + 1) * NUM_FILTERS].set(
            w.reshape(fs * EMB_DIM, NUM_FILTERS))
        bk = bk.at[:, i * NUM_FILTERS:(i + 1) * NUM_FILTERS].set(b)

    wp_pad = jnp.zeros((N_PAD, F_PAD), jnp.float32)
    wp_pad = wp_pad.at[:N_REAL, :FEATURE_DIM].set(wp)
    bp_pad = jnp.zeros((1, F_PAD), jnp.float32).at[:, :FEATURE_DIM].set(bp)

    # mask[t, col] = 0 if time position t is valid for that column's filter
    # size (t <= S - fs) and col is a real feature column, else -1e30.
    t_idx = jnp.arange(SEQ_LEN)[:, None]
    col = jnp.arange(N_PAD)[None, :]
    fs_of_col = jnp.asarray(FILTER_SIZES)[
        jnp.minimum(col // NUM_FILTERS, len(FILTER_SIZES) - 1)]
    valid = (t_idx <= SEQ_LEN - fs_of_col) & (col < N_REAL)
    mask = jnp.where(valid, 0.0, NEG).astype(jnp.float32)

    return (wk.astype(jnp.bfloat16), bk, mask,
            wp_pad.astype(jnp.bfloat16), bp_pad)


# --------------------------------------------------------------------------
# Wrapper-side im2col (lane-dense, bf16) + tile sizing
# --------------------------------------------------------------------------
def _build_im2col_slab(x_emb):
    """(B, S, E) f32 -> (B*S, K_PAD) bf16 lane-dense im2col slab."""
    B, S, E = x_emb.shape
    xp = jnp.pad(x_emb, ((0, 0), (0, FS_MAX - 1), (0, 0)))       # zero time pad
    slab = jnp.concatenate([xp[:, dt:dt + S, :] for dt in range(FS_MAX)],
                           axis=-1)                              # (B, S, 192)
    slab = jnp.pad(slab, ((0, 0), (0, 0), (0, K_PAD - K_REAL)))  # (B, S, 256)
    return slab.reshape(B * S, K_PAD).astype(jnp.bfloat16)


def _pick_batch_tile(B, S):
    """Batch tile: multiple of 8, >=2 grid steps at production sizes, and
    tb*S capped so f32 accumulator + double-buffered bf16 slab fit v7x VMEM."""
    if B < 16 or B % 8 != 0:
        return B                               # toy sizes: single fat step
    rows_cap = 8192                            # tb*S rows of 256-wide intermediates
    tb = min(B // 2, max(8, rows_cap // S))
    tb -= tb % 8
    while tb > 8 and B % tb != 0:
        tb -= 8
    return tb if (tb >= 8 and B % tb == 0) else B


def _vmem_limit_bytes(tb, S):
    slab = 2 * tb * S * K_PAD * 2              # double-buffered bf16 LHS tile
    acc = tb * S * N_PAD * 4                   # f32 pre-pool accumulator
    weights = 2 * (K_PAD * N_PAD * 2 + N_PAD * F_PAD * 2
                   + (2 + S) * N_PAD * 4)      # resident slabs (double-buffered)
    out = 2 * tb * F_PAD * 4
    need = slab + acc + weights + out
    return int(min(max(2 * need, 8 << 20), 60 << 20))   # v7x-safe cap


def textcnn_forward(x_emb, packed):
    """x_emb: (B, S, E) f32 embeddings; packed: output of pack_params()."""
    wk, bk, mask, wp_pad, bp_pad = packed
    B, S, E = x_emb.shape

    slab = _build_im2col_slab(x_emb)           # (B*S, K_PAD) bf16
    tb = _pick_batch_tile(B, S)
    rows = tb * S
    grid = (pl.cdiv(B, tb),)

    out = pl.pallas_call(
        textcnn_kernel,
        out_shape=jax.ShapeDtypeStruct((B, F_PAD), jnp.float32),
        grid=grid,
        in_specs=[
            pl.BlockSpec((rows, K_PAD), lambda b: (b, 0)),       # streamed LHS
            pl.BlockSpec((K_PAD, N_PAD), lambda b: (0, 0)),      # resident weights
            pl.BlockSpec((1, N_PAD), lambda b: (0, 0)),
            pl.BlockSpec((S, N_PAD), lambda b: (0, 0)),
            pl.BlockSpec((N_PAD, F_PAD), lambda b: (0, 0)),
            pl.BlockSpec((1, F_PAD), lambda b: (0, 0)),
        ],
        out_specs=pl.BlockSpec((tb, F_PAD), lambda b: (b, 0)),
        compiler_params=pltpu.CompilerParams(
            dimension_semantics=("parallel",),
            vmem_limit_bytes=_vmem_limit_bytes(tb, S)),
    )(slab, wk, bk, mask, wp_pad, bp_pad)
    return out[:, :FEATURE_DIM]


# --------------------------------------------------------------------------
# Pure-JAX f32 reference (original module semantics)
# --------------------------------------------------------------------------
def reference_forward(x_emb, conv_weights, conv_biases, wp, bp):
    B, S, E = x_emb.shape
    pooled = []
    for w, b in zip(conv_weights, conv_biases):
        fs = w.shape[0]
        t = S - fs + 1
        acc = jnp.zeros((B, t, NUM_FILTERS), jnp.float32)
        for dt in range(fs):
            acc = acc + jnp.einsum('bte,ef->btf', x_emb[:, dt:dt + t, :], w[dt])
        c = jax.nn.relu(acc + b[None, :, :])
        pooled.append(jnp.max(c, axis=1))
    h = jnp.concatenate(pooled, axis=-1)
    return jax.nn.relu(h @ wp + bp)


if __name__ == "__main__":
    key = jax.random.PRNGKey(0)
    keys = jax.random.split(key, 4 + 2 * len(FILTER_SIZES))

    # token ids (B, S)
    token_ids = jax.random.randint(keys[0], (BATCH, SEQ_LEN), 0, VOCAB_SIZE)
    # embedding matrix (vocab, emb_dim) — frozen / not trainable in the module
    emb_matrix = jax.random.normal(keys[1], (VOCAB_SIZE, EMB_DIM), jnp.float32) * 0.1

    # conv weights (fs, E, F) + biases (1, F), deterministic init
    conv_weights, conv_biases = [], []
    for i, fs in enumerate(FILTER_SIZES):
        conv_weights.append(
            jax.random.normal(keys[2 + 2 * i], (fs, EMB_DIM, NUM_FILTERS),
                              jnp.float32) * 0.05)
        conv_biases.append(
            jax.random.normal(keys[3 + 2 * i], (1, NUM_FILTERS),
                              jnp.float32) * 0.01)

    # projection Dense(num_filters*6 -> feature_dim)
    wp = jax.random.normal(keys[-2],
                           (NUM_FILTERS * len(FILTER_SIZES), FEATURE_DIM),
                           jnp.float32) * 0.05
    bp = jax.random.normal(keys[-1], (1, FEATURE_DIM), jnp.float32) * 0.01

    # One-time parameter packing (hoisted out of the forward path).
    packed = jax.tree.map(jax.block_until_ready,
                          pack_params(conv_weights, conv_biases, wp, bp))

    # embedding lookup (glue, plain JAX gather) -> (B, S, E)
    # TODO(synk): could be fused into the kernel via PrefetchScalarGridSpec
    # (SMEM token ids + VMEM-resident bf16 table) once B*S makes it HBM-bound.
    x_emb = jnp.take(emb_matrix, token_ids, axis=0).astype(jnp.float32)

    fwd = jax.jit(textcnn_forward)
    out = jax.block_until_ready(fwd(x_emb, packed))

    ref = reference_forward(x_emb, conv_weights, conv_biases, wp, bp)
    assert out.shape == (BATCH, FEATURE_DIM)
    # bf16 matmul operands (f32 accumulate) -> relaxed tolerance vs f32 reference
    assert jnp.allclose(out, ref, atol=1e-2, rtol=5e-2)

    print("KERNEL_OK")
</pallas_src>

<mosaic_0001>
module attributes {stable_mosaic.version = 11 : i64} {
  func.func @textcnn_kernel(%arg0: i32, %arg1: memref<32x256xbf16, #tpu.memory_space<vmem>>, %arg2: memref<256x256xbf16, #tpu.memory_space<vmem>>, %arg3: memref<1x256xf32, #tpu.memory_space<vmem>>, %arg4: memref<16x256xf32, #tpu.memory_space<vmem>>, %arg5: memref<256x128xbf16, #tpu.memory_space<vmem>>, %arg6: memref<1x128xf32, #tpu.memory_space<vmem>>, %arg7: memref<2x128xf32, #tpu.memory_space<vmem>>) attributes {dimension_semantics = [#tpu.dimension_semantics<parallel>], iteration_bounds = array<i64: 1>, scalar_prefetch = 0 : i64, scratch_operands = 0 : i64, tpu.core_type = #tpu.core_type<tc>, window_params = [{transform_indices = @transform_0, window_bounds = array<i64: 32, 256>}, {pipeline_mode = #tpu.pipeline_mode<synchronous>, transform_indices = @transform_1, window_bounds = array<i64: 256, 256>}, {pipeline_mode = #tpu.pipeline_mode<synchronous>, transform_indices = @transform_2, window_bounds = array<i64: 1, 256>}, {pipeline_mode = #tpu.pipeline_mode<synchronous>, transform_indices = @transform_3, window_bounds = array<i64: 16, 256>}, {pipeline_mode = #tpu.pipeline_mode<synchronous>, transform_indices = @transform_4, window_bounds = array<i64: 256, 128>}, {pipeline_mode = #tpu.pipeline_mode<synchronous>, transform_indices = @transform_5, window_bounds = array<i64: 1, 128>}, {transform_indices = @transform_6, window_bounds = array<i64: 2, 128>}]} {
    %c0 = arith.constant 0 : index
    %c0_0 = arith.constant 0 : index
    %0 = vector.load %arg1[%c0, %c0_0] : memref<32x256xbf16, #tpu.memory_space<vmem>>, vector<32x256xbf16>
    %c0_1 = arith.constant 0 : index
    %c0_2 = arith.constant 0 : index
    %1 = vector.load %arg2[%c0_1, %c0_2] : memref<256x256xbf16, #tpu.memory_space<vmem>>, vector<256x256xbf16>
    %cst = arith.constant dense<0.000000e+00> : vector<32x256xf32>
    %2 = tpu.matmul %0, %1, %cst {dimension_numbers = #tpu.dot_dimension_numbers<[1], [0], [0], [1], [0, 0, 1, 1], [], []>} : vector<32x256xbf16>, vector<256x256xbf16>, vector<32x256xf32> -> vector<32x256xf32>
    %3 = vector.shape_cast %2 : vector<32x256xf32> to vector<2x16x256xf32>
    %c0_3 = arith.constant 0 : index
    %c0_4 = arith.constant 0 : index
    %4 = vector.load %arg4[%c0_3, %c0_4] : memref<16x256xf32, #tpu.memory_space<vmem>>, vector<16x256xf32>
    %5 = vector.shape_cast %4 : vector<16x256xf32> to vector<1x16x256xf32>
    %6 = vector.broadcast %5 : vector<1x16x256xf32> to vector<2x16x256xf32>
    %7 = arith.addf %3, %6 : vector<2x16x256xf32>
    %cst_5 = arith.constant dense<0xFF800000> : vector<2x256xf32>
    %8 = vector.multi_reduction <maximumf>, %7, %cst_5 [1] : vector<2x16x256xf32> to vector<2x256xf32>
    %c0_6 = arith.constant 0 : index
    %c0_7 = arith.constant 0 : index
    %9 = vector.load %arg3[%c0_6, %c0_7] : memref<1x256xf32, #tpu.memory_space<vmem>>, vector<1x256xf32>
    %10 = vector.broadcast %9 : vector<1x256xf32> to vector<2x256xf32>
    %11 = arith.addf %8, %10 : vector<2x256xf32>
    %cst_8 = arith.constant 0.000000e+00 : f32
    %12 = vector.broadcast %cst_8 : f32 to vector<2x256xf32>
    %13 = arith.maximumf %11, %12 : vector<2x256xf32>
    %14 = arith.truncf %13 : vector<2x256xf32> to vector<2x256xbf16>
    %c0_9 = arith.constant 0 : index
    %c0_10 = arith.constant 0 : index
    %15 = vector.load %arg5[%c0_9, %c0_10] : memref<256x128xbf16, #tpu.memory_space<vmem>>, vector<256x128xbf16>
    %cst_11 = arith.constant dense<0.000000e+00> : vector<2x128xf32>
    %16 = tpu.matmul %14, %15, %cst_11 {dimension_numbers = #tpu.dot_dimension_numbers<[1], [0], [0], [1], [0, 0, 1, 1], [], []>} : vector<2x256xbf16>, vector<256x128xbf16>, vector<2x128xf32> -> vector<2x128xf32>
    %c0_12 = arith.constant 0 : index
    %c0_13 = arith.constant 0 : index
    %17 = vector.load %arg6[%c0_12, %c0_13] : memref<1x128xf32, #tpu.memory_space<vmem>>, vector<1x128xf32>
    %18 = vector.broadcast %17 : vector<1x128xf32> to vector<2x128xf32>
    %19 = arith.addf %16, %18 : vector<2x128xf32>
    %cst_14 = arith.constant 0.000000e+00 : f32
    %20 = vector.broadcast %cst_14 : f32 to vector<2x128xf32>
    %21 = arith.maximumf %19, %20 : vector<2x128xf32>
    %c0_15 = arith.constant 0 : index
    %c0_16 = arith.constant 0 : index
    %22 = vector.load %arg7[%c0_15, %c0_16] : memref<2x128xf32, #tpu.memory_space<vmem>>, vector<2x128xf32>
    tpu.vector_store %arg7[%c0_15, %c0_16], %21 {strides = array<i32>} : memref<2x128xf32, #tpu.memory_space<vmem>>, vector<2x128xf32>,
    return
  }
  func.func @transform_0(%arg0: i32) -> (i32, i32) {
    %c0_i32 = arith.constant 0 : i32
    %c0_i32_0 = arith.constant 0 : i32
    return %arg0, %c0_i32 : i32, i32
  }
  func.func @transform_1(%arg0: i32) -> (i32, i32) {
    %c0_i32 = arith.constant 0 : i32
    %c0_i32_0 = arith.constant 0 : i32
    %c0_i32_1 = arith.constant 0 : i32
    return %c0_i32, %c0_i32_0 : i32, i32
  }
  func.func @transform_2(%arg0: i32) -> (i32, i32) {
    %c0_i32 = arith.constant 0 : i32
    %c0_i32_0 = arith.constant 0 : i32
    %c0_i32_1 = arith.constant 0 : i32
    return %c0_i32, %c0_i32_0 : i32, i32
  }
  func.func @transform_3(%arg0: i32) -> (i32, i32) {
    %c0_i32 = arith.constant 0 : i32
    %c0_i32_0 = arith.constant 0 : i32
    %c0_i32_1 = arith.constant 0 : i32
    return %c0_i32, %c0_i32_0 : i32, i32
  }
  func.func @transform_4(%arg0: i32) -> (i32, i32) {
    %c0_i32 = arith.constant 0 : i32
    %c0_i32_0 = arith.constant 0 : i32
    %c0_i32_1 = arith.constant 0 : i32
    return %c0_i32, %c0_i32_0 : i32, i32
  }
  func.func @transform_5(%arg0: i32) -> (i32, i32) {
    %c0_i32 = arith.constant 0 : i32
    %c0_i32_0 = arith.constant 0 : i32
    %c0_i32_1 = arith.constant 0 : i32
    return %c0_i32, %c0_i32_0 : i32, i32
  }
  func.func @transform_6(%arg0: i32) -> (i32, i32) {
    %c0_i32 = arith.constant 0 : i32
    %c0_i32_0 = arith.constant 0 : i32
    return %arg0, %c0_i32 : i32, i32
  }
}

</mosaic_0001>

<bundles_post_ra>
// kernel: textcnn_forward.1
= control target key start
LH: loop header
LB: loop body
LE: loop exit
PB: predicated region body
PF: predicated region fallthrough
CT: control target
= control target key end

     0   :  { %s958_s0 = inlined_call_operand.vmem [shape: bf16[32,256], index: 0, kind: input, shape index: {}]   ;;  %s959_s1 = inlined_call_operand.vmem [shape: bf16[256,256], index: 1, kind: input, shape index: {}]   ;;  %s960_s2 = inlined_call_operand.vmem [shape: f32[1,256], index: 2, kind: input, shape index: {}]   ;;  %s961_s3 = inlined_call_operand.vmem [shape: f32[16,256], index: 3, kind: input, shape index: {}]   ;;  %s962_s4 = inlined_call_operand.vmem [shape: bf16[256,128], index: 4, kind: input, shape index: {}]   ;;  %s963_s5 = inlined_call_operand.vmem [shape: f32[1,128], index: 5, kind: input, shape index: {}]   ;;  %s964_s6 = inlined_call_operand.hbm [shape: f32[2,128], index: 6, kind: output, shape index: {}]  }
   0x1   :  { %v642_v0 = vld [vmem:[%s959_s1 + $0x4] ss:$8 sps:$4 sm:$0xff]   ;;  %v644_v1 = vld [vmem:[%s959_s1] ss:$8 sps:$4 sm:$0xff]   ;;  %v645_v2 = vld [vmem:[%s959_s1 + $0x14] ss:$8 sps:$4 sm:$0xff]  }
   0x2   :  { %241 = vmatprep.subr.bf16.mxu0 %v642_v0  ;;  %v647_v3 = vld [vmem:[%s959_s1 + $0x10] ss:$8 sps:$4 sm:$0xff]   ;;  %v648_v4 = vld [vmem:[%s959_s1 + $0x24] ss:$8 sps:$4 sm:$0xff]   ;;  %v650_v5 = vld [vmem:[%s959_s1 + $0x20] ss:$8 sps:$4 sm:$0xff]  }
   0x3   :  { %242 = vmatpush1.bf16.msra.mxu0 %v644_v1  ;;  %v651_v6 = vld [vmem:[%s959_s1 + $0x34] ss:$8 sps:$4 sm:$0xff]   ;;  %v653_v7 = vld [vmem:[%s959_s1 + $0x30] ss:$8 sps:$4 sm:$0xff]   ;;  %v654_v8 = vld [vmem:[%s959_s1 + $0x44] ss:$8 sps:$4 sm:$0xff]  }
   0x4   :  { %243 = vmatprep.subr.bf16.mxu0 %v645_v2  ;;  %v656_v9 = vld [vmem:[%s959_s1 + $0x40] ss:$8 sps:$4 sm:$0xff]   ;;  %v657_v10 = vld [vmem:[%s959_s1 + $0x54] ss:$8 sps:$4 sm:$0xff]   ;;  %v659_v11 = vld [vmem:[%s959_s1 + $0x50] ss:$8 sps:$4 sm:$0xff]  }
   0x5   :  { %v660_v12 = vld [vmem:[%s959_s1 + $0x64] ss:$8 sps:$4 sm:$0xff]   ;;  %v662_v14 = vld [vmem:[%s959_s1 + $0x60] ss:$8 sps:$4 sm:$0xff]   ;;  %v663_v15 = vld [vmem:[%s959_s1 + $0x74] ss:$8 sps:$4 sm:$0xff]  }
   0x6   :  { %v692_v13 = vld [vmem:[%s958_s0 + $0x4] ss:$8 sps:$4 sm:$0xff]   ;;  %v665_v16 = vld [vmem:[%s959_s1 + $0x70] ss:$8 sps:$4 sm:$0xff]   ;;  %v668_v18 = vld [vmem:[%s959_s1 + $0x80] ss:$8 sps:$4 sm:$0xff]  }
   0x7   :  { %244 = vmatpush1.bf16.msra.mxu0 %v647_v3  ;;  %273 = vmatprep.mubr.bf16.mxu0 %v692_v13  ;;  %v666_v17 = vld [vmem:[%s959_s1 + $0x84] ss:$8 sps:$4 sm:$0xff]   ;;  %v669_v19 = vld [vmem:[%s959_s1 + $0x94] ss:$8 sps:$4 sm:$0xff]  }
   0x8   :  { %245 = vmatprep.subr.bf16.mxu0 %v648_v4 }
   0xb   :  { %246 = vmatpush1.bf16.msra.mxu0 %v650_v5 }
   0xc   :  { %247 = vmatprep.subr.bf16.mxu0 %v651_v6 }
   0xf   :  { %248 = vmatpush1.bf16.msra.mxu0 %v653_v7 }
  0x10   :  { %249 = vmatprep.subr.bf16.mxu0 %v654_v8 }
  0x13   :  { %250 = vmatpush1.bf16.msra.mxu0 %v656_v9 }
  0x14   :  { %251 = vmatprep.subr.bf16.mxu0 %v657_v10 }
  0x17   :  { %252 = vmatpush1.bf16.msra.mxu0 %v659_v11 }
  0x18   :  { %253 = vmatprep.subr.bf16.mxu0 %v660_v12 }
  0x1b   :  { %254 = vmatpush1.bf16.msra.mxu0 %v662_v14 }
  0x1c   :  { %255 = vmatprep.subr.bf16.mxu0 %v663_v15 }
  0x1f   :  { %256 = vmatpush1.bf16.msra.mxu0 %v665_v16 }
  0x20   :  { %257 = vmatprep.subr.bf16.mxu0 %v666_v17 }
  0x21   :  { %11 = vsyncpa [#allocation3], 0  ;;  %v671_v20 = vld [vmem:[%s959_s1 + $0x90] ss:$8 sps:$4 sm:$0xff]   ;;  %v672_v21 = vld [vmem:[%s959_s1 + $0xa4] ss:$8 sps:$4 sm:$0xff]   ;;  %v336_v3 = vlaneseq }
  0x22   :  { %v674_v22 = vld [vmem:[%s959_s1 + $0xa0] ss:$8 sps:$4 sm:$0xff]   ;;  %v675_v23 = vld [vmem:[%s959_s1 + $0xb4] ss:$8 sps:$4 sm:$0xff]   ;;  %v677_v24 = vld [vmem:[%s959_s1 + $0xb0] ss:$8 sps:$4 sm:$0xff]  }
  0x23   :  { %258 = vmatpush1.bf16.msra.mxu0 %v668_v18  ;;  %v678_v25 = vld [vmem:[%s959_s1 + $0xc4] ss:$8 sps:$4 sm:$0xff]   ;;  %v680_v26 = vld [vmem:[%s959_s1 + $0xc0] ss:$8 sps:$4 sm:$0xff]   ;;  %v681_v27 = vld [vmem:[%s959_s1 + $0xd4] ss:$8 sps:$4 sm:$0xff]  }
  0x24   :  { %259 = vmatprep.subr.bf16.mxu0 %v669_v19  ;;  %v683_v28 = vld [vmem:[%s959_s1 + $0xd0] ss:$8 sps:$4 sm:$0xff]   ;;  %v684_v29 = vld [vmem:[%s959_s1 + $0xe4] ss:$8 sps:$4 sm:$0xff]   ;;  %v686_v30 = vld [vmem:[%s959_s1 + $0xe0] ss:$8 sps:$4 sm:$0xff]  }
  0x25   :  { %v687_v31 = vld [vmem:[%s959_s1 + $0xf4] ss:$8 sps:$4 sm:$0xff]   ;;  %v689_v32 = vld [vmem:[%s959_s1 + $0xf0] ss:$8 sps:$4 sm:$0xff]   ;;  %v690_v33 = vld [vmem:[%s958_s0] ss:$8 sps:$4 sm:$0xff]  }
  0x26   :  { %v693_v34 = vld [vmem:[%s958_s0 + $0x14] ss:$8 sps:$4 sm:$0xff]   ;;  %v695_v35 = vld [vmem:[%s958_s0 + $0x10] ss:$8 sps:$4 sm:$0xff]   ;;  %v696_v36 = vld [vmem:[%s962_s4 + $0x40] sm:$0xff]   ;;  %v337_v14 = vshrl.u32 %v336_v3, 7 }
  0x27   :  { %260 = vmatpush1.bf16.msra.mxu0 %v671_v20  ;;  %v697_v37 = vld [vmem:[%s962_s4] sm:$0xff]   ;;  %619 = vmatprep.subr.bf16.mxu1 %v696_v36  ;;  %v698_v38 = vld [vmem:[%s962_s4 + $0x48] sm:$0xff]   ;;  %v700_v40 = vld [vmem:[%s962_s4 + $0x50] sm:$0xff]   ;;  %vm406_vm0 = vcmask 1041409   ;;  %s736_s10 = smov [#allocation2]  }
  0x28   :  { %261 = vmatprep.subr.bf16.mxu0 %v672_v21  ;;  %620 = vmatpush3.bf16.msra.mxu1 %v697_v37  ;;  %v699_v39 = vld [vmem:[%s962_s4 + $0x8] sm:$0xff]   ;;  %v701_v41 = vld [vmem:[%s962_s4 + $0x10] sm:$0xff]   ;;  %v702_v42 = vld [vmem:[%s962_s4 + $0x58] sm:$0xff]   ;;  %s558_s11 = sshll.u32 %s736_s10, 4  ;;  %s559_s11 = int_to_ptr.vmem [resolvable:$true] %s558_s11 }
  0x29   :  { %621 = vmatprep.subr.bf16.mxu1 %v698_v38  ;;  %v703_v43 = vld [vmem:[%s962_s4 + $0x18] sm:$0xff]   ;;  %v704_v44 = vld [vmem:[%s962_s4 + $0x60] sm:$0xff]   ;;  %v706_v46 = vld [vmem:[%s962_s4 + $0x68] sm:$0xff]   ;;  %s712_s12 = scalar_lea.vmem %s559_s11, 32  ;;  %p717_p1 = scmp.lt.s32.totalorder %s559_s11, %s559_s11 }
  0x2a   :  { %v705_v45 = vld [vmem:[%s962_s4 + $0x20] sm:$0xff]   ;;  %v707_v47 = vld [vmem:[%s962_s4 + $0x28] sm:$0xff]   ;;  %v708_v48 = vld [vmem:[%s962_s4 + $0x70] sm:$0xff]   ;;  %p713_p0 = scmp.ne.s32.totalorder %s559_s11, %s712_s12  ;;  %p718_p2 = scmp.lt.s32.totalorder %s712_s12, %s712_s12 }
  0x2b   :  { %262 = vmatpush1.bf16.msra.mxu0 %v674_v22  ;;  %v709_v49 = vld [vmem:[%s962_s4 + $0x30] sm:$0xff]   ;;  %v710_v50 = vld [vmem:[%s962_s4 + $0x78] sm:$0xff]   ;;  %v294_v53 = vld [vmem:[%s961_s3] sm:$0xff] }
  0x2c   :  { %263 = vmatprep.subr.bf16.mxu0 %v675_v23  ;;  %622 = vmatpush3.bf16.msra.mxu1 %v699_v39  ;;  %v711_v51 = vld [vmem:[%s962_s4 + $0x38] sm:$0xff]   ;;  %v296_v54 = vld [vmem:[%s961_s3 + $0x10] sm:$0xff]  ;;  %v295_v56 = vld [vmem:[%s961_s3 + $0x8] sm:$0xff]  ;;  %p719_p3 = por %p718_p2, %p717_p1 }
  0x2d   :  { %623 = vmatprep.subr.bf16.mxu1 %v700_v40  ;;  %v297_v57 = vld [vmem:[%s961_s3 + $0x18] sm:$0xff] }
  0x2e   :  { %p720_p4 = pnand %p719_p3, %p713_p0 }
  0x2f   :  { %264 = vmatpush1.bf16.msra.mxu0 %v677_v24  ;;  %v338_v24 = vsub.s32 0, %v337_v14 }
  0x30   :  { %265 = vmatprep.subr.bf16.mxu0 %v678_v25  ;;  %624 = vmatpush3.bf16.msra.mxu1 %v701_v41 }
  0x31   :  { %625 = vmatprep.subr.bf16.mxu1 %v702_v42 }
  0x33   :  { %266 = vmatpush1.bf16.msra.mxu0 %v680_v26 }
  0x34   :  { %267 = vmatprep.subr.bf16.mxu0 %v681_v27  ;;  %626 = vmatpush3.bf16.msra.mxu1 %v703_v43  ;;  %v334_v27 = vld [vmem:[%s960_s2] sm:$0x3] }
  0x35   :  { %627 = vmatprep.subr.bf16.mxu1 %v704_v44 }
  0x37   :  { %268 = vmatpush1.bf16.msra.mxu0 %v683_v28  ;;  %v342_v28 = vsub.s32 1, %v337_v14 }
  0x38   :  { %269 = vmatprep.subr.bf16.mxu0 %v684_v29  ;;  %628 = vmatpush3.bf16.msra.mxu1 %v705_v45 }
  0x39   :  { %629 = vmatprep.subr.bf16.mxu1 %v706_v46  ;;  %v343_v36 = vrot.slane %v334_v27, %v342_v28 }
  0x3b   :  { %270 = vmatpush1.bf16.msra.mxu0 %v686_v30 }
  0x3c   :  { %271 = vmatprep.subr.bf16.mxu0 %v687_v31  ;;  %630 = vmatpush3.bf16.msra.mxu1 %v707_v47 }
  0x3d   :  { %631 = vmatprep.subr.bf16.mxu1 %v708_v48 }
  0x3f   :  { %272 = vmatpush1.bf16.msra.mxu0 %v689_v32 }
  0x40   :  { %632 = vmatpush3.bf16.msra.mxu1 %v709_v49 }
  0x41   :  { %633 = vmatprep.subr.bf16.mxu1 %v710_v50 }
  0x42   :  { %274 = vmatmul.mubr.bf16.vlgmr.msra.gmra.mrb[0].mxu0 %v690_v33  ;;  %v339_v33 = vrot.slane %v334_v27, %v338_v24 }
  0x43   :  { %283 = vmatprep.mubr.bf16.mxu0 %v693_v34 }
  0x44   :  { %634 = vmatpush3.bf16.msra.mxu1 %v711_v51 }
  0x4a   :  { %284 = vmatmul.mubr.bf16.gmra.mrb[4].mxu0 %v695_v35 }
 0x115   :  { %v275_v52 = vpop.f32.mrb[0].mxu0 }
 0x116   :  { %v277_v55 = vpop.f32.mrb[1].mxu0  ;;  %v298_v59 = vadd.f32 %v294_v53, %v275_v52 }
 0x117   :  { %v279_v58 = vpop.f32.mrb[2].mxu0  ;;  %v299_v62 = vadd.f32 %v295_v56, %v277_v55 }
 0x118   :  { %v300_v60 = vadd.f32 %v296_v54, %v279_v58  ;;  %v281_v61 = vpop.f32.mrb[3].mxu0 }
 0x119   :  { %v301_v63 = vadd.f32 %v297_v57, %v281_v61 }
 0x11a   :  { %v306_v0 = vmax.f32 %v298_v59, %v300_v60 }
 0x11b   :  { %v313_v1 = vmax.f32 %v299_v62, %v301_v63 }
 0x11c   :  { %v307_v2 = vrot.slane %v306_v0, 4 }
 0x11d   :  { %v314_v4 = vrot.slane %v313_v1, 4  ;;  %v285_v5 = vpop.f32.mrb[4].mxu0 }
 0x11e   :  { %v308_v6 = vmax.f32 %v306_v0, %v307_v2  ;;  %v287_v7 = vpop.f32.mrb[5].mxu0  ;;  %v302_v11 = vadd.f32 %v294_v53, %v285_v5  ;;  %v602_v2 = vld [vmem:[%s963_s5] ss:$0 sm:$0xff] }
 0x11f   :  { %v315_v8 = vmax.f32 %v313_v1, %v314_v4  ;;  %v289_v9 = vpop.f32.mrb[6].mxu0  ;;  %v303_v16 = vadd.f32 %v295_v56, %v287_v7 }
 0x120   :  { %v309_v10 = vrot.slane %v308_v6, 2  ;;  %v304_v12 = vadd.f32 %v296_v54, %v289_v9  ;;  %v291_v13 = vpop.f32.mrb[7].mxu0 }
 0x121   :  { %v316_v15 = vrot.slane %v315_v8, 2  ;;  %v305_v17 = vadd.f32 %v297_v57, %v291_v13 }
 0x122   :  { %v310_v18 = vmax.f32 %v308_v6, %v309_v10  ;;  %v320_v19 = vmax.f32 %v302_v11, %v304_v12 }
 0x123   :  { %v317_v20 = vmax.f32 %v315_v8, %v316_v15  ;;  %v327_v21 = vmax.f32 %v303_v16, %v305_v17 }
 0x124   :  { %v311_v22 = vrot.slane %v310_v18, 1  ;;  %v321_v23 = vrot.slane %v320_v19, 4 }
 0x125   :  { %v318_v25 = vrot.slane %v317_v20, 1  ;;  %v328_v26 = vrot.slane %v327_v21, 4 }
 0x126   :  { %v322_v29 = vmax.f32 %v320_v19, %v321_v23  ;;  %v312_v31 = vmax.f32 %v310_v18, %v311_v22 }
 0x127   :  { %v329_v30 = vmax.f32 %v327_v21, %v328_v26  ;;  %v319_v35 = vmax.f32 %v317_v20, %v318_v25 }
 0x128   :  { %v323_v32 = vrot.slane %v322_v29, 2  ;;  %v346_v40 = vadd.f32 %v339_v33, %v312_v31 }
 0x129   :  { %v330_v34 = vrot.slane %v329_v30, 2  ;;  %v347_v42 = vadd.f32 %v343_v36, %v319_v35 }
 0x12a   :  { %v324_v37 = vmax.f32 %v322_v29, %v323_v32  ;;  %v350_v46 = vmax.f32 %v346_v40, 0.0 }
 0x12b   :  { %v331_v38 = vmax.f32 %v329_v30, %v330_v34  ;;  %v351_v48 = vmax.f32 %v347_v42, 0.0 }
 0x12c   :  { %v325_v39 = vrot.slane %v324_v37, 1  ;;  %v354_v51 = vpack.c.bf16 %v350_v46, %v350_v46 }
 0x12d   :  { %v332_v41 = vrot.slane %v331_v38, 1  ;;  %v355_v53 = vpack.c.bf16 %v351_v48, %v351_v48 }
 0x12e   :  { %v326_v43 = vmax.f32 %v324_v37, %v325_v39  ;;  %v401_v57 = vunpack.c.l.b16 %v354_v51 }
 0x12f   :  { %v333_v44 = vmax.f32 %v331_v38, %v332_v41  ;;  %v402_v59 = vunpack.c.l.b16 %v355_v53 }
 0x130   :  { %v348_v45 = vadd.f32 %v339_v33, %v326_v43 }
 0x131   :  { %v349_v47 = vadd.f32 %v343_v36, %v333_v44 }
 0x132   :  { %v352_v49 = vmax.f32 %v348_v45, 0.0 }
 0x133   :  { %v353_v50 = vmax.f32 %v349_v47, 0.0 }
 0x134   :  { %v356_v52 = vpack.c.bf16 %v352_v49, %v352_v49 }
 0x135   :  { %v357_v54 = vpack.c.bf16 %v353_v50, %v353_v50 }
 0x136   :  { %v403_v55 = vunpack.c.l.b16 %v356_v52 }
 0x137   :  { %v404_v56 = vunpack.c.l.b16 %v357_v54 }
 0x138   :  { %v405_v58 = vrot.slane %v403_v55, 7 }
 0x139   :  { %v408_v60 = vrot.slane %v404_v56, 7 }
 0x13a   :  { %v407_v61 = vsel %vm406_vm0, %v405_v58, %v401_v57 }
 0x13b   :  { %v409_v62 = vsel %vm406_vm0, %v408_v60, %v402_v59  ;;  %v410_v0 = vpack.c.b16 %v407_v61, %v407_v61 }
 0x13c   :  { %v411_v63 = vpack.c.b16 %v409_v62, %v409_v62 }
 0x13e   :  { %542 = vmatprep.mubr.bf16.mxu1 %v411_v63 }
 0x13f   :  { %543 = vmatmul.mubr.bf16.vlgmr.msra.gmra.mrb[0].mxu1 %v410_v0 }
 0x212   :  { %v635_v1 = vpop.f32.mrb[0].mxu1 }
 0x213   :  { %v636_v3 = vpop.f32.mrb[1].mxu1 }
 0x214   :  { %v637_v4 = vadd.f32 %v636_v3, %v635_v1  ;;  %v638_v5 = vpop.f32.mrb[2].mxu1 }
 0x215   :  { %v639_v6 = vpop.f32.mrb[3].mxu1 }
 0x216   :  { %v545_v7 = vadd.f32 %v637_v4, %v602_v2 }
 0x218   :  { %v550_v8 = vmax.f32 %v545_v7, 0.0 }
 0x21a   :  { %551 = vst [vmem:[#allocation2] sm:$0x3] %v550_v8 }
 0x21b   :  { %723 = shalt.err (!%p720_p4)
}
 0x21c   :  { %s724_s5 = scalar_lea.hbm %s964_s6, 32 }
 0x21d   :  { %p725_p5 = scmp.ne.s32.totalorder %s964_s6, %s724_s5  ;;  %p728_p6 = scmp.lt.u32.totalorder %s724_s5, %s964_s6 }
 0x21f   :  { %p730_p7 = pnand %p728_p6, %p725_p5 }
 0x221   :  { %733 = shalt.err (!%p730_p7)
}
 0x222   :  { %561 = dma.vmem_to_hbm [thread:$0]  %s559_s11, 32, %s964_s6, [#allocation3]  }
 0x223   :  { %734 = dma.done.wait [#allocation3], 32  }
 0x224   :  { %735 = vsyncadd [#allocation3], 4294967264 }
 0x225   :  { %565 = vsyncpa [#allocation3], 1 }

</bundles_post_ra>
